<compile_context>
chip_gen: v7x
topology: tpu7x:2x2x1
jax: 0.10.0
libtpu: 0.0.40
codegen_flags: <defaults>
</compile_context>

<pallas_src>
import functools

import jax
import jax.numpy as jnp
from jax.experimental import pallas as pl
from jax.experimental.pallas import tpu as pltpu

BN_EPS = 1e-5

_VMEM = pl.BlockSpec(memory_space=pltpu.MemorySpace.VMEM)


def _round_up(v, m):
    return (v + m - 1) // m * m


# ----------------------------- Pallas kernel --------------------------------

def gnn_fused_kernel(a_ref, p_ref, x_ref, w_ref, out_ref, *,
                     layout, num_relations, n_nodes):
    """Entire R-GIN network + global mean pool; everything resident in VMEM.

    a_ref : [R*N, N]  rows r*N:(r+1)*N hold (A_r + I)        (GIN eps = 0)
    p_ref : [G, N]    row-normalised graph-assignment matrix  (mean pool)
    x_ref : [N, F0]   node features (graphs batched block-diagonally)
    w_ref : [rows, C] packed parameter slab; `layout` gives static row offsets
    """
    R, N = num_relations, n_nodes
    A = a_ref[...]                                   # [R*N, N]
    x = x_ref[...]                                   # [N, F0]
    num_layers = len(layout)

    for li, (fin, fout, off_b, off_self, off_w1, off_w2) in enumerate(layout):
        # static slices of the packed slab (row offsets 8-aligned)
        w_selfT = w_ref[off_self:off_self + fin, :fout]            # [fin, fout]
        w1_bd = w_ref[off_w1:off_w1 + R * fin, :R * fout]          # [R*fin, R*fout] (BN folded)
        w2_bd = w_ref[off_w2:off_w2 + R * fout, :R * fout]         # [R*fout, R*fout]
        b1 = w_ref[off_b:off_b + 1, :R * fout]                     # [1, R*fout]  (BN folded)
        b_out = w_ref[off_b + 1:off_b + 2, :fout]                  # [1, fout]  = b_self + sum_r b2_r

        # self-loop Linear (bias already includes sum_r b2_r)
        out = jnp.dot(x, w_selfT, preferred_element_type=jnp.float32) + b_out

        # GIN aggregation for ALL relations with one MXU push (M = R*N);
        # hs[r*N:(r+1)*N] == (A_r + I) @ x
        hs = jnp.dot(A, x, preferred_element_type=jnp.float32)      # [R*N, fin]

        # re-layout row blocks -> column blocks so the per-relation MLPs
        # collapse into block-diagonal matmuls (2 matmuls for all relations)
        hs_wide = jnp.concatenate(
            [hs[r * N:(r + 1) * N, :] for r in range(R)], axis=1)   # [N, R*fin]

        h = jnp.dot(hs_wide, w1_bd, preferred_element_type=jnp.float32) + b1
        h = jnp.maximum(h, 0.0)
        h = jnp.dot(h, w2_bd, preferred_element_type=jnp.float32)   # [N, R*fout]

        for r in range(R):                                          # relation sum
            out = out + h[:, r * fout:(r + 1) * fout]

        if li != num_layers - 1:     # inter-layer ReLU (Dropout = identity in eval)
            out = jnp.maximum(out, 0.0)
        x = out

    # fused global_mean_pool: out = P @ x
    out_ref[...] = jnp.dot(p_ref[...], x, preferred_element_type=jnp.float32)


# ------------------------- one-time (eager) prep -----------------------------

def prepare_gnn(A, P, layer_params, num_relations):
    """Hoisted out of the jitted per-call path: pad node count, build the
    stacked (A_r + I), fold eval BatchNorm into Linear1, merge per-relation
    weights block-diagonally and pack every parameter into one f32 slab."""
    R, N, _ = A.shape
    Np = _round_up(N, 8)                             # sublane-align node count
    if Np != N:
        A = jnp.pad(A, ((0, 0), (0, Np - N), (0, Np - N)))
        P = jnp.pad(P, ((0, 0), (0, Np - N)))
    A_stacked = (A + jnp.eye(Np, dtype=A.dtype)[None]).reshape(R * Np, Np)

    fouts = [int(p["w_self"].shape[0]) for p in layer_params]
    fins = [int(p["w_self"].shape[1]) for p in layer_params]
    cmax = R * max(fouts)

    pieces, cursor = [], 0

    def add(mat):
        nonlocal cursor
        rows, cols = mat.shape
        rows_p = _round_up(rows, 8)
        pieces.append(jnp.pad(mat.astype(jnp.float32),
                              ((0, rows_p - rows), (0, cmax - cols))))
        off = cursor
        cursor += rows_p
        return off

    layout = []
    for l, p in enumerate(layer_params):
        fin, fout = fins[l], fouts[l]
        scale = p["gamma"] * jax.lax.rsqrt(p["rvar"] + BN_EPS)       # [R,1,fout]
        w1T = jnp.transpose(p["w1"], (0, 2, 1)) * scale              # BN fold   [R,fin,fout]
        b1 = (p["b1"] - p["rmean"]) * scale + p["beta"]              # BN fold   [R,1,fout]
        w2T = jnp.transpose(p["w2"], (0, 2, 1))                      # [R,fout,fout]

        b1_cat = b1.reshape(1, R * fout)
        b_out = (p["b_self"] + jnp.sum(p["b2"], axis=0)).reshape(1, fout)
        bias_blk = jnp.concatenate(
            [jnp.pad(b1_cat, ((0, 0), (0, cmax - R * fout))),
             jnp.pad(b_out, ((0, 0), (0, cmax - fout)))], axis=0)    # [2, cmax]

        off_b = add(bias_blk)
        off_self = add(p["w_self"].T)                                            # [fin, fout]
        off_w1 = add(jax.scipy.linalg.block_diag(*[w1T[r] for r in range(R)]))   # [R*fin, R*fout]
        off_w2 = add(jax.scipy.linalg.block_diag(*[w2T[r] for r in range(R)]))   # [R*fout, R*fout]
        layout.append((fin, fout, off_b, off_self, off_w1, off_w2))

    w_pack = jnp.concatenate(pieces, axis=0)                         # single DMA slab
    return A_stacked, P, w_pack, tuple(layout)


# ------------------------------ jitted wrapper --------------------------------

@functools.partial(jax.jit,
                   static_argnames=("layout", "num_relations", "num_graphs", "f_out"))
def gnn_forward(x, A_stacked, P, w_pack, *, layout, num_relations, num_graphs, f_out):
    n_nodes = A_stacked.shape[1]
    if x.shape[0] != n_nodes:                        # trace-time node padding
        x = jnp.pad(x, ((0, n_nodes - x.shape[0]), (0, 0)))
    kernel = functools.partial(gnn_fused_kernel, layout=layout,
                               num_relations=num_relations, n_nodes=n_nodes)
    return pl.pallas_call(
        kernel,
        out_shape=jax.ShapeDtypeStruct((num_graphs, f_out), jnp.float32),
        in_specs=[_VMEM, _VMEM, _VMEM, _VMEM],
        out_specs=_VMEM,
    )(A_stacked, P, x, w_pack)


# --------------------------- pure-JAX reference -----------------------------

def gnn_reference(x, A, P, layer_params):
    num_layers = len(layer_params)
    for i, p in enumerate(layer_params):
        out = x @ p["w_self"].T + p["b_self"]
        for r in range(A.shape[0]):
            h = x + A[r] @ x
            h = h @ p["w1"][r].T + p["b1"][r]
            h = (h - p["rmean"][r]) / jnp.sqrt(p["rvar"][r] + BN_EPS) * p["gamma"][r] + p["beta"][r]
            h = jnp.maximum(h, 0.0)
            h = h @ p["w2"][r].T + p["b2"][r]
            out = out + h
        if i != num_layers - 1:
            out = jnp.maximum(out, 0.0)
        x = out
    return P @ x


# --------------------------------- main --------------------------------------

def make_layer_params(key, fin, fout, R):
    ks = jax.random.split(key, 10)
    return {
        "w_self": 0.1 * jax.random.normal(ks[0], (fout, fin), jnp.float32),
        "b_self": 0.1 * jax.random.normal(ks[1], (1, fout), jnp.float32),
        "w1": 0.1 * jax.random.normal(ks[2], (R, fout, fin), jnp.float32),
        "b1": 0.1 * jax.random.normal(ks[3], (R, 1, fout), jnp.float32),
        # non-trivial BatchNorm1d running stats (eval) to exercise the BN fold
        "gamma": 1.0 + 0.1 * jax.random.normal(ks[4], (R, 1, fout), jnp.float32),
        "beta": 0.1 * jax.random.normal(ks[5], (R, 1, fout), jnp.float32),
        "rmean": 0.1 * jax.random.normal(ks[6], (R, 1, fout), jnp.float32),
        "rvar": 1.0 + 0.5 * jax.random.uniform(ks[7], (R, 1, fout), jnp.float32),
        "w2": 0.1 * jax.random.normal(ks[8], (R, fout, fout), jnp.float32),
        "b2": 0.1 * jax.random.normal(ks[9], (R, 1, fout), jnp.float32),
    }


if __name__ == "__main__":
    # args: input_dim=8, hidden_layers=(32, 32), output_dim=8, num_relations=2,
    #       dropout=0.0 (eval), layer_type='R-GIN', last_layer_fa=False
    INPUT_DIM, HIDDEN, OUTPUT_DIM = 8, (32, 32), 8
    NUM_RELATIONS = 2
    N_GRAPHS, NODES_PER_GRAPH, EDGES_PER_GRAPH = 4, 16, 48
    N_NODES = N_GRAPHS * NODES_PER_GRAPH                 # graphs batched PyG-style

    key = jax.random.PRNGKey(0)
    kx, ks, kd, kt, kp = jax.random.split(key, 5)

    # node features and batched graph structure (edges stay within each graph)
    x = jax.random.normal(kx, (N_NODES, INPUT_DIM), jnp.float32)
    offs = (jnp.arange(N_GRAPHS) * NODES_PER_GRAPH)[:, None]
    src = (jax.random.randint(ks, (N_GRAPHS, EDGES_PER_GRAPH), 0, NODES_PER_GRAPH) + offs).reshape(-1)
    dst = (jax.random.randint(kd, (N_GRAPHS, EDGES_PER_GRAPH), 0, NODES_PER_GRAPH) + offs).reshape(-1)
    edge_type = jax.random.randint(kt, (src.shape[0],), 0, NUM_RELATIONS)
    batch = jnp.repeat(jnp.arange(N_GRAPHS), NODES_PER_GRAPH)

    # dense per-relation adjacency: A[r, dst, src] = edge multiplicity
    A = jnp.zeros((NUM_RELATIONS, N_NODES, N_NODES), jnp.float32)
    A = A.at[edge_type, dst, src].add(1.0)

    # mean-pool assignment matrix P[g, n] = 1/|graph g| if batch[n] == g
    counts = jnp.zeros((N_GRAPHS,), jnp.float32).at[batch].add(1.0)
    P = (jax.nn.one_hot(batch, N_GRAPHS, dtype=jnp.float32).T) / counts[:, None]

    # deterministic parameters for each RGINConv layer
    feats = [INPUT_DIM] + list(HIDDEN) + [OUTPUT_DIM]
    pkeys = jax.random.split(kp, len(feats) - 1)
    layer_params = [make_layer_params(pkeys[i], feats[i], feats[i + 1], NUM_RELATIONS)
                    for i in range(len(feats) - 1)]

    # one-time prep (outside the jitted per-call path)
    A_stacked, P_pad, w_pack, layout = prepare_gnn(A, P, layer_params, NUM_RELATIONS)

    out = jax.block_until_ready(gnn_forward(
        x, A_stacked, P_pad, w_pack,
        layout=layout, num_relations=NUM_RELATIONS,
        num_graphs=N_GRAPHS, f_out=OUTPUT_DIM))

    ref = gnn_reference(x, A, P, layer_params)

    assert out.shape == (N_GRAPHS, OUTPUT_DIM)
    assert jnp.allclose(out, ref, rtol=1e-4, atol=1e-4), "mismatch vs reference"
    print("KERNEL_OK")
</pallas_src>

<mosaic_0001>
module attributes {stable_mosaic.version = 11 : i64} {
  func.func @gnn_fused_kernel(%arg0: memref<128x64xf32, #tpu.memory_space<vmem>>, %arg1: memref<4x64xf32, #tpu.memory_space<vmem>>, %arg2: memref<64x8xf32, #tpu.memory_space<vmem>>, %arg3: memref<384x64xf32, #tpu.memory_space<vmem>>, %arg4: memref<4x8xf32, #tpu.memory_space<vmem>>) attributes {dimension_semantics = [], scalar_prefetch = 0 : i64, scratch_operands = 0 : i64, tpu.core_type = #tpu.core_type<tc>} {
    %c0 = arith.constant 0 : index
    %c0_0 = arith.constant 0 : index
    %0 = vector.load %arg0[%c0, %c0_0] : memref<128x64xf32, #tpu.memory_space<vmem>>, vector<128x64xf32>
    %c0_1 = arith.constant 0 : index
    %c0_2 = arith.constant 0 : index
    %1 = vector.load %arg2[%c0_1, %c0_2] : memref<64x8xf32, #tpu.memory_space<vmem>>, vector<64x8xf32>
    %c8 = arith.constant 8 : index
    %c0_3 = arith.constant 0 : index
    %2 = vector.load %arg3[%c8, %c0_3] : memref<384x64xf32, #tpu.memory_space<vmem>>, vector<8x32xf32>
    %c16 = arith.constant 16 : index
    %c0_4 = arith.constant 0 : index
    %3 = vector.load %arg3[%c16, %c0_4] : memref<384x64xf32, #tpu.memory_space<vmem>>, vector<16x64xf32>
    %c32 = arith.constant 32 : index
    %c0_5 = arith.constant 0 : index
    %4 = vector.load %arg3[%c32, %c0_5] : memref<384x64xf32, #tpu.memory_space<vmem>>, vector<64x64xf32>
    %c0_6 = arith.constant 0 : index
    %c0_7 = arith.constant 0 : index
    %5 = vector.load %arg3[%c0_6, %c0_7] : memref<384x64xf32, #tpu.memory_space<vmem>>, vector<1x64xf32>
    %c1 = arith.constant 1 : index
    %c0_8 = arith.constant 0 : index
    %6 = vector.load %arg3[%c1, %c0_8] : memref<384x64xf32, #tpu.memory_space<vmem>>, vector<1x32xf32>
    %cst = arith.constant dense<0.000000e+00> : vector<64x32xf32>
    %7 = tpu.matmul %1, %2, %cst {dimension_numbers = #tpu.dot_dimension_numbers<[1], [0], [0], [1], [0, 0, 1, 1], [], []>} : vector<64x8xf32>, vector<8x32xf32>, vector<64x32xf32> -> vector<64x32xf32>
    %8 = vector.broadcast %6 : vector<1x32xf32> to vector<64x32xf32>
    %9 = arith.addf %7, %8 : vector<64x32xf32>
    %cst_9 = arith.constant dense<0.000000e+00> : vector<128x8xf32>
    %10 = tpu.matmul %0, %1, %cst_9 {dimension_numbers = #tpu.dot_dimension_numbers<[1], [0], [0], [1], [0, 0, 1, 1], [], []>} : vector<128x64xf32>, vector<64x8xf32>, vector<128x8xf32> -> vector<128x8xf32>
    %11 = vector.extract_strided_slice %10 {offsets = [0, 0], sizes = [64, 8], strides = [1, 1]} : vector<128x8xf32> to vector<64x8xf32>
    %12 = vector.extract_strided_slice %10 {offsets = [64, 0], sizes = [64, 8], strides = [1, 1]} : vector<128x8xf32> to vector<64x8xf32>
    %13 = tpu.concatenate %11, %12 in 1 : vector<64x8xf32>, vector<64x8xf32> -> vector<64x16xf32>
    %cst_10 = arith.constant dense<0.000000e+00> : vector<64x64xf32>
    %14 = tpu.matmul %13, %3, %cst_10 {dimension_numbers = #tpu.dot_dimension_numbers<[1], [0], [0], [1], [0, 0, 1, 1], [], []>} : vector<64x16xf32>, vector<16x64xf32>, vector<64x64xf32> -> vector<64x64xf32>
    %15 = vector.broadcast %5 : vector<1x64xf32> to vector<64x64xf32>
    %16 = arith.addf %14, %15 : vector<64x64xf32>
    %cst_11 = arith.constant 0.000000e+00 : f32
    %17 = vector.broadcast %cst_11 : f32 to vector<64x64xf32>
    %18 = arith.maximumf %16, %17 : vector<64x64xf32>
    %cst_12 = arith.constant dense<0.000000e+00> : vector<64x64xf32>
    %19 = tpu.matmul %18, %4, %cst_12 {dimension_numbers = #tpu.dot_dimension_numbers<[1], [0], [0], [1], [0, 0, 1, 1], [], []>} : vector<64x64xf32>, vector<64x64xf32>, vector<64x64xf32> -> vector<64x64xf32>
    %20 = vector.extract_strided_slice %19 {offsets = [0, 0], sizes = [64, 32], strides = [1, 1]} : vector<64x64xf32> to vector<64x32xf32>
    %21 = arith.addf %9, %20 : vector<64x32xf32>
    %22 = vector.extract_strided_slice %19 {offsets = [0, 32], sizes = [64, 32], strides = [1, 1]} : vector<64x64xf32> to vector<64x32xf32>
    %23 = arith.addf %21, %22 : vector<64x32xf32>
    %cst_13 = arith.constant 0.000000e+00 : f32
    %24 = vector.broadcast %cst_13 : f32 to vector<64x32xf32>
    %25 = arith.maximumf %23, %24 : vector<64x32xf32>
    %c104 = arith.constant 104 : index
    %c0_14 = arith.constant 0 : index
    %26 = vector.load %arg3[%c104, %c0_14] : memref<384x64xf32, #tpu.memory_space<vmem>>, vector<32x32xf32>
    %c136 = arith.constant 136 : index
    %c0_15 = arith.constant 0 : index
    %27 = vector.load %arg3[%c136, %c0_15] : memref<384x64xf32, #tpu.memory_space<vmem>>, vector<64x64xf32>
    %c200 = arith.constant 200 : index
    %c0_16 = arith.constant 0 : index
    %28 = vector.load %arg3[%c200, %c0_16] : memref<384x64xf32, #tpu.memory_space<vmem>>, vector<64x64xf32>
    %c96 = arith.constant 96 : index
    %c0_17 = arith.constant 0 : index
    %29 = vector.load %arg3[%c96, %c0_17] : memref<384x64xf32, #tpu.memory_space<vmem>>, vector<1x64xf32>
    %c97 = arith.constant 97 : index
    %c0_18 = arith.constant 0 : index
    %30 = vector.load %arg3[%c97, %c0_18] : memref<384x64xf32, #tpu.memory_space<vmem>>, vector<1x32xf32>
    %cst_19 = arith.constant dense<0.000000e+00> : vector<64x32xf32>
    %31 = tpu.matmul %25, %26, %cst_19 {dimension_numbers = #tpu.dot_dimension_numbers<[1], [0], [0], [1], [0, 0, 1, 1], [], []>} : vector<64x32xf32>, vector<32x32xf32>, vector<64x32xf32> -> vector<64x32xf32>
    %32 = vector.broadcast %30 : vector<1x32xf32> to vector<64x32xf32>
    %33 = arith.addf %31, %32 : vector<64x32xf32>
    %cst_20 = arith.constant dense<0.000000e+00> : vector<128x32xf32>
    %34 = tpu.matmul %0, %25, %cst_20 {dimension_numbers = #tpu.dot_dimension_numbers<[1], [0], [0], [1], [0, 0, 1, 1], [], []>} : vector<128x64xf32>, vector<64x32xf32>, vector<128x32xf32> -> vector<128x32xf32>
    %35 = vector.extract_strided_slice %34 {offsets = [0, 0], sizes = [64, 32], strides = [1, 1]} : vector<128x32xf32> to vector<64x32xf32>
    %36 = vector.extract_strided_slice %34 {offsets = [64, 0], sizes = [64, 32], strides = [1, 1]} : vector<128x32xf32> to vector<64x32xf32>
    %37 = tpu.concatenate %35, %36 in 1 : vector<64x32xf32>, vector<64x32xf32> -> vector<64x64xf32>
    %cst_21 = arith.constant dense<0.000000e+00> : vector<64x64xf32>
    %38 = tpu.matmul %37, %27, %cst_21 {dimension_numbers = #tpu.dot_dimension_numbers<[1], [0], [0], [1], [0, 0, 1, 1], [], []>} : vector<64x64xf32>, vector<64x64xf32>, vector<64x64xf32> -> vector<64x64xf32>
    %39 = vector.broadcast %29 : vector<1x64xf32> to vector<64x64xf32>
    %40 = arith.addf %38, %39 : vector<64x64xf32>
    %cst_22 = arith.constant 0.000000e+00 : f32
    %41 = vector.broadcast %cst_22 : f32 to vector<64x64xf32>
    %42 = arith.maximumf %40, %41 : vector<64x64xf32>
    %cst_23 = arith.constant dense<0.000000e+00> : vector<64x64xf32>
    %43 = tpu.matmul %42, %28, %cst_23 {dimension_numbers = #tpu.dot_dimension_numbers<[1], [0], [0], [1], [0, 0, 1, 1], [], []>} : vector<64x64xf32>, vector<64x64xf32>, vector<64x64xf32> -> vector<64x64xf32>
    %44 = vector.extract_strided_slice %43 {offsets = [0, 0], sizes = [64, 32], strides = [1, 1]} : vector<64x64xf32> to vector<64x32xf32>
    %45 = arith.addf %33, %44 : vector<64x32xf32>
    %46 = vector.extract_strided_slice %43 {offsets = [0, 32], sizes = [64, 32], strides = [1, 1]} : vector<64x64xf32> to vector<64x32xf32>
    %47 = arith.addf %45, %46 : vector<64x32xf32>
    %cst_24 = arith.constant 0.000000e+00 : f32
    %48 = vector.broadcast %cst_24 : f32 to vector<64x32xf32>
    %49 = arith.maximumf %47, %48 : vector<64x32xf32>
    %c272 = arith.constant 272 : index
    %c0_25 = arith.constant 0 : index
    %50 = vector.load %arg3[%c272, %c0_25] : memref<384x64xf32, #tpu.memory_space<vmem>>, vector<32x8xf32>
    %c304 = arith.constant 304 : index
    %c0_26 = arith.constant 0 : index
    %51 = vector.load %arg3[%c304, %c0_26] : memref<384x64xf32, #tpu.memory_space<vmem>>, vector<64x16xf32>
    %c368 = arith.constant 368 : index
    %c0_27 = arith.constant 0 : index
    %52 = vector.load %arg3[%c368, %c0_27] : memref<384x64xf32, #tpu.memory_space<vmem>>, vector<16x16xf32>
    %c264 = arith.constant 264 : index
    %c0_28 = arith.constant 0 : index
    %53 = vector.load %arg3[%c264, %c0_28] : memref<384x64xf32, #tpu.memory_space<vmem>>, vector<1x16xf32>
    %c265 = arith.constant 265 : index
    %c0_29 = arith.constant 0 : index
    %54 = vector.load %arg3[%c265, %c0_29] : memref<384x64xf32, #tpu.memory_space<vmem>>, vector<1x8xf32>
    %cst_30 = arith.constant dense<0.000000e+00> : vector<64x8xf32>
    %55 = tpu.matmul %49, %50, %cst_30 {dimension_numbers = #tpu.dot_dimension_numbers<[1], [0], [0], [1], [0, 0, 1, 1], [], []>} : vector<64x32xf32>, vector<32x8xf32>, vector<64x8xf32> -> vector<64x8xf32>
    %56 = vector.broadcast %54 : vector<1x8xf32> to vector<64x8xf32>
    %57 = arith.addf %55, %56 : vector<64x8xf32>
    %cst_31 = arith.constant dense<0.000000e+00> : vector<128x32xf32>
    %58 = tpu.matmul %0, %49, %cst_31 {dimension_numbers = #tpu.dot_dimension_numbers<[1], [0], [0], [1], [0, 0, 1, 1], [], []>} : vector<128x64xf32>, vector<64x32xf32>, vector<128x32xf32> -> vector<128x32xf32>
    %59 = vector.extract_strided_slice %58 {offsets = [0, 0], sizes = [64, 32], strides = [1, 1]} : vector<128x32xf32> to vector<64x32xf32>
    %60 = vector.extract_strided_slice %58 {offsets = [64, 0], sizes = [64, 32], strides = [1, 1]} : vector<128x32xf32> to vector<64x32xf32>
    %61 = tpu.concatenate %59, %60 in 1 : vector<64x32xf32>, vector<64x32xf32> -> vector<64x64xf32>
    %cst_32 = arith.constant dense<0.000000e+00> : vector<64x16xf32>
    %62 = tpu.matmul %61, %51, %cst_32 {dimension_numbers = #tpu.dot_dimension_numbers<[1], [0], [0], [1], [0, 0, 1, 1], [], []>} : vector<64x64xf32>, vector<64x16xf32>, vector<64x16xf32> -> vector<64x16xf32>
    %63 = vector.broadcast %53 : vector<1x16xf32> to vector<64x16xf32>
    %64 = arith.addf %62, %63 : vector<64x16xf32>
    %cst_33 = arith.constant 0.000000e+00 : f32
    %65 = vector.broadcast %cst_33 : f32 to vector<64x16xf32>
    %66 = arith.maximumf %64, %65 : vector<64x16xf32>
    %cst_34 = arith.constant dense<0.000000e+00> : vector<64x16xf32>
    %67 = tpu.matmul %66, %52, %cst_34 {dimension_numbers = #tpu.dot_dimension_numbers<[1], [0], [0], [1], [0, 0, 1, 1], [], []>} : vector<64x16xf32>, vector<16x16xf32>, vector<64x16xf32> -> vector<64x16xf32>
    %68 = vector.extract_strided_slice %67 {offsets = [0, 0], sizes = [64, 8], strides = [1, 1]} : vector<64x16xf32> to vector<64x8xf32>
    %69 = arith.addf %57, %68 : vector<64x8xf32>
    %70 = vector.extract_strided_slice %67 {offsets = [0, 8], sizes = [64, 8], strides = [1, 1]} : vector<64x16xf32> to vector<64x8xf32>
    %71 = arith.addf %69, %70 : vector<64x8xf32>
    %c0_35 = arith.constant 0 : index
    %c0_36 = arith.constant 0 : index
    %72 = vector.load %arg1[%c0_35, %c0_36] : memref<4x64xf32, #tpu.memory_space<vmem>>, vector<4x64xf32>
    %cst_37 = arith.constant dense<0.000000e+00> : vector<4x8xf32>
    %73 = tpu.matmul %72, %71, %cst_37 {dimension_numbers = #tpu.dot_dimension_numbers<[1], [0], [0], [1], [0, 0, 1, 1], [], []>} : vector<4x64xf32>, vector<64x8xf32>, vector<4x8xf32> -> vector<4x8xf32>
    %c0_38 = arith.constant 0 : index
    %c0_39 = arith.constant 0 : index
    %74 = vector.load %arg4[%c0_38, %c0_39] : memref<4x8xf32, #tpu.memory_space<vmem>>, vector<4x8xf32>
    tpu.vector_store %arg4[%c0_38, %c0_39], %73 {strides = array<i32>} : memref<4x8xf32, #tpu.memory_space<vmem>>, vector<4x8xf32>,
    return
  }
}

</mosaic_0001>

<bundles_post_ra>
// kernel: gnn_forward.1
= control target key start
LH: loop header
LB: loop body
LE: loop exit
PB: predicated region body
PF: predicated region fallthrough
CT: control target
= control target key end

     0   :  { %vm189_vm0 = vcmask 523264   ;;  %s3614_s0 = inlined_call_operand.vmem [shape: f32[128,64], index: 0, kind: input, shape index: {}]   ;;  %s3615_s1 = inlined_call_operand.vmem [shape: f32[4,64], index: 1, kind: input, shape index: {}]   ;;  %s3616_s2 = inlined_call_operand.vmem [shape: f32[64,8], index: 2, kind: input, shape index: {}]   ;;  %s3617_s3 = inlined_call_operand.vmem [shape: f32[384,64], index: 3, kind: input, shape index: {}]   ;;  %s3618_s4 = inlined_call_operand.hbm [shape: f32[4,8], index: 4, kind: output, shape index: {}]  }
   0x1   :  { %v34_v0 = vld [vmem:[%s3616_s2] sm:$0xff]  ;;  %v35_v1 = vld [vmem:[%s3616_s2 + $0x8] sm:$0xff]  ;;  %v36_v2 = vld [vmem:[%s3616_s2 + $0x10] sm:$0xff] }
   0x2   :  { %v2821_v3 = vpack.c.bf16 %v35_v1, %v34_v0  ;;  %v37_v4 = vld [vmem:[%s3616_s2 + $0x18] sm:$0xff]  ;;  %v38_v6 = vld [vmem:[%s3616_s2 + $0x20] sm:$0xff]  ;;  %v39_v7 = vld [vmem:[%s3616_s2 + $0x28] sm:$0xff] }
   0x3   :  { %v2825_v5 = vpack.c.bf16 %v37_v4, %v36_v2  ;;  %v3055_v8 = vld [vmem:[%s3614_s0] sm:$0xff]  ;;  %v2829_v9 = vpack.c.bf16 %v39_v7, %v38_v6  ;;  %v40_v10 = vld [vmem:[%s3616_s2 + $0x30] sm:$0xff]  ;;  %v41_v11 = vld [vmem:[%s3616_s2 + $0x38] sm:$0xff] }
   0x4   :  { %2822 = vmatprep.subr.bf16.mxu1 %v2821_v3  ;;  %2514 = vmatprep.mubr.msk.f32.mxu1 %vm189_vm0, %v3055_v8 }
   0x5   :  { %2824 = vmatpush3.bf16.msra.mxu1 %v2821_v3 }
   0x6   :  { %2826 = vmatprep.subr.bf16.mxu1 %v2825_v5 }
   0x9   :  { %2828 = vmatpush3.bf16.msra.mxu1 %v2825_v5 }
   0xa   :  { %9 = vsyncpa [#allocation3], 0  ;;  %2830 = vmatprep.subr.bf16.mxu1 %v2829_v9  ;;  %v2833_v12 = vpack.c.bf16 %v41_v11, %v40_v10  ;;  %v3068_v13 = vld [vmem:[%s3614_s0 + $0x8] sm:$0xff]  ;;  %v3073_v14 = vld [vmem:[%s3614_s0 + $0x10] sm:$0xff]  ;;  %vm59_vm1 = vcmask 64512   ;;  %s3001_s14 = smov 8  }
   0xb   :  { %v3082_v15 = vld [vmem:[%s3614_s0 + $0x18] sm:$0xff]  ;;  %v3087_v16 = vld [vmem:[%s3614_s0 + $0x20] sm:$0xff]  ;;  %v3096_v17 = vld [vmem:[%s3614_s0 + $0x28] sm:$0xff]  ;;  %2486 = vmatprep.mubr.msk.f32.mxu0 %vm59_vm1, %v34_v0  ;;  %vm427_vm2 = vcmask 130048   ;;  %s3002_s15 = smov 96   ;;  %vm776_vm3 = vcmask 261120  }
   0xc   :  { %v3101_v18 = vld [vmem:[%s3614_s0 + $0x30] sm:$0xff]  ;;  %v3110_v19 = vld [vmem:[%s3614_s0 + $0x38] sm:$0xff]  ;;  %v3115_v20 = vld [vmem:[%s3614_s0 + $0x40] sm:$0xff]  ;;  %s3003_s6 = smov 32   ;;  %s3005_s30 = smov 120   ;;  %vm3006_vm4 = vmmov 0  }
   0xd   :  { %2832 = vmatpush3.bf16.msra.mxu1 %v2829_v9  ;;  %v3124_v21 = vld [vmem:[%s3614_s0 + $0x48] sm:$0xff]  ;;  %v3129_v22 = vld [vmem:[%s3614_s0 + $0x50] sm:$0xff]  ;;  %v3138_v23 = vld [vmem:[%s3614_s0 + $0x58] sm:$0xff]  ;;  %s3008_s7 = smov [#allocation2]   ;;  %vm2143_vm5 = vcmask 60416  }
   0xe   :  { %2834 = vmatprep.subr.bf16.mxu1 %v2833_v12  ;;  %v3143_v24 = vld [vmem:[%s3614_s0 + $0x60] sm:$0xff]  ;;  %v3152_v25 = vld [vmem:[%s3614_s0 + $0x68] sm:$0xff]  ;;  %v3157_v26 = vld [vmem:[%s3614_s0 + $0x70] sm:$0xff]  ;;  %s2151_s8 = sshll.u32 %s3008_s7, 4  ;;  %s2152_s8 = int_to_ptr.vmem [resolvable:$true] %s2151_s8 }
   0xf   :  { %v3166_v27 = vld [vmem:[%s3614_s0 + $0x78] sm:$0xff]  ;;  %v42_v28 = vld [vmem:[%s3617_s3 + $0x8] sm:$0xff]  ;;  %v43_v31 = vld [vmem:[%s3617_s3 + $0x10] sm:$0xff]  ;;  %p2982_p1 = scmp.lt.s32.totalorder %s2152_s8, %s2152_s8 }
  0x10   :  { %2484 = vmatprep.subr.mxu0 %v42_v28  ;;  %v44_v32 = vld [vmem:[%s3617_s3 + $0x18] sm:$0xff]  ;;  %v45_v44 = vld [vmem:[%s3617_s3 + $0x20] sm:$0xff]  ;;  %v46_v45 = vld [vmem:[%s3617_s3 + $0x28] sm:$0xff] }
  0x11   :  { %2836 = vmatpush3.bf16.msra.mxu1 %v2833_v12  ;;  %2485 = vmatpush3.msra.mxu0 %v42_v28  ;;  %v2837_v34 = vpack.c.bf16 %v44_v32, %v43_v31  ;;  %v2841_v47 = vpack.c.bf16 %v46_v45, %v45_v44  ;;  %v47_v60 = vld [vmem:[%s3617_s3 + $0x30] sm:$0xff]  ;;  %v48_v61 = vld [vmem:[%s3617_s3 + $0x38] sm:$0xff]  ;;  %v50_v5 = vld [vmem:[%s3617_s3 + $0x48] sm:$0xff] }
  0x12   :  { %2487 = vmatmul.mubr.msk.f32.vlgmr.msra.gmra.mrb[0].mxu0 %vm59_vm1, %v35_v1  ;;  %v2845_v1 = vpack.c.bf16 %v48_v61, %v47_v60 }
  0x13   :  { %2489 = vmatprep.mubr.msk.f32.mxu0 %vm59_vm1, %v36_v2  ;;  %2838 = vmatprep.subr.bf16.mxu0 %v2837_v34 }
  0x14   :  { %2515 = vmatmul.mubr.msk.f32.vlgmr.msra.gmra.mrb[0].mxu1 %vm189_vm0, %v3068_v13  ;;  %2840 = vmatpush3.bf16.msra.mxu0 %v2837_v34  ;;  %v52_v34 = vld [vmem:[%s3617_s3 + $0x58] sm:$0xff] }
  0x15   :  { %2517 = vmatprep.mubr.msk.f32.mxu1 %vm189_vm0, %v3073_v14  ;;  %2842 = vmatprep.subr.bf16.mxu0 %v2841_v47 }
  0x16   :  { %2490 = vmatmul.mubr.msk.f32.gmra.mrb[2].mxu0 %vm59_vm1, %v37_v4  ;;  %v49_v4 = vld [vmem:[%s3617_s3 + $0x40] sm:$0xff] }
  0x17   :  { %2492 = vmatprep.mubr.msk.f32.mxu0 %vm59_vm1, %v38_v6  ;;  %v2849_v9 = vpack.c.bf16 %v50_v5, %v49_v4  ;;  %v750_v5 = vld [vmem:[%s3617_s3 + $0x68] sm:$0xff] }
  0x18   :  { %2518 = vmatmul.mubr.msk.f32.gmra.mrb[2].mxu1 %vm189_vm0, %v3082_v15 }
  0x19   :  { %2520 = vmatprep.mubr.msk.f32.mxu1 %vm189_vm0, %v3087_v16 }
  0x1a   :  { %2493 = vmatmul.mubr.msk.f32.gmra.mrb[4].mxu0 %vm59_vm1, %v39_v7 }
  0x1b   :  { %2495 = vmatprep.mubr.msk.f32.mxu0 %vm59_vm1, %v40_v10 }
  0x1c   :  { %2521 = vmatmul.mubr.msk.f32.gmra.mrb[4].mxu1 %vm189_vm0, %v3096_v17 }
  0x1d   :  { %2523 = vmatprep.mubr.msk.f32.mxu1 %vm189_vm0, %v3101_v18 }
  0x1e   :  { %2496 = vmatmul.mubr.msk.f32.gmra.mrb[6].mxu0 %vm59_vm1, %v41_v11 }
  0x20   :  { %2524 = vmatmul.mubr.msk.f32.gmra.mrb[6].mxu1 %vm189_vm0, %v3110_v19 }
  0x21   :  { %2526 = vmatprep.mubr.msk.f32.mxu1 %vm189_vm0, %v3115_v20 }
  0x24   :  { %2527 = vmatmul.mubr.msk.f32.gmra.mrb[8].mxu1 %vm189_vm0, %v3124_v21 }
  0x25   :  { %2529 = vmatprep.mubr.msk.f32.mxu1 %vm189_vm0, %v3129_v22 }
  0x28   :  { %2530 = vmatmul.mubr.msk.f32.gmra.mrb[10].mxu1 %vm189_vm0, %v3138_v23 }
  0x29   :  { %2532 = vmatprep.mubr.msk.f32.mxu1 %vm189_vm0, %v3143_v24 }
  0x2c   :  { %2533 = vmatmul.mubr.msk.f32.gmra.mrb[12].mxu1 %vm189_vm0, %v3152_v25 }
  0x2d   :  { %2535 = vmatprep.mubr.msk.f32.mxu1 %vm189_vm0, %v3157_v26 }
  0x30   :  { %2536 = vmatmul.mubr.msk.f32.gmra.mrb[14].mxu1 %vm189_vm0, %v3166_v27 }
  0xe5   :  { %v3195_v51 = vpop.f32.mrb[0].mxu0 }
  0xe6   :  { %v3197_v52 = vpop.f32.mrb[1].mxu0 }
  0xe7   :  { %v2516_v29 = vpop.f32.mrb[0].mxu1 }
  0xe8   :  { %v304_v30 = vpop.f32.mrb[1].mxu1 }
  0xe9   :  { %v3199_v53 = vpop.f32.mrb[2].mxu0 }
  0xea   :  { %v3201_v54 = vpop.f32.mrb[3].mxu0 }
  0xeb   :  { %v2519_v33 = vpop.f32.mrb[2].mxu1 }
  0xec   :  { %v314_v35 = vpop.f32.mrb[3].mxu1 }
  0xed   :  { %v3203_v55 = vpop.f32.mrb[4].mxu0 }
  0xee   :  { %v3205_v56 = vpop.f32.mrb[5].mxu0 }
  0xef   :  { %v2522_v36 = vpop.f32.mrb[4].mxu1 }
  0xf0   :  { %v324_v37 = vpop.f32.mrb[5].mxu1 }
  0xf1   :  { %v3207_v58 = vpop.f32.mrb[6].mxu0 }
  0xf2   :  { %v3216_v62 = vpop.f32.mrb[7].mxu0 }
  0xf3   :  { %v3187_v38 = vpop.f32.mrb[6].mxu1 }
  0xf4   :  { %v334_v39 = vpop.f32.mrb[7].mxu1 }
  0xf7   :  { %v2528_v40 = vpop.f32.mrb[8].mxu1 }
  0xf8   :  { %v344_v41 = vpop.f32.mrb[9].mxu1 }
  0xf9   :  { %391 = vrot.lane.b32.xlu0 %v344_v41, %s3001_s14 }
  0xfb   :  { %v2531_v42 = vpop.f32.mrb[10].mxu1 }
  0xfc   :  { %v354_v43 = vpop.f32.mrb[11].mxu1 }
  0xfd   :  { %393 = vrot.lane.b32.xlu0 %v2528_v40, %s3001_s14  ;;  %395 = vrot.lane.b32.xlu1 %v354_v43, %s3001_s14 }
  0xff   :  { %v2534_v46 = vpop.f32.mrb[12].mxu1 }
 0x100   :  { %v364_v48 = vpop.f32.mrb[13].mxu1 }
 0x101   :  { %397 = vrot.lane.b32.xlu1 %v2531_v42, %s3001_s14  ;;  %399 = vrot.lane.b32.xlu0 %v364_v48, %s3001_s14 }
 0x103   :  { %v2537_v49 = vpop.f32.mrb[14].mxu1 }
 0x104   :  { %v374_v50 = vpop.f32.mrb[15].mxu1 }
 0x105   :  { %401 = vrot.lane.b32.xlu1 %v2534_v46, %s3001_s14  ;;  %403 = vrot.lane.b32.xlu0 %v374_v50, %s3001_s14 }
 0x109   :  { %405 = vrot.lane.b32.xlu1 %v2537_v49, %s3001_s14 }
 0x16b   :  { %v392_v57 = vpop.permute.xlu0 %391 }
 0x16c   :  { %v415_v59 = vsel %vm59_vm1, %v304_v30, %v392_v57 }
 0x16d   :  { %2542 = vmatprep.mubr.msk.f32.mxu0 %vm427_vm2, %v415_v59 }
 0x16f   :  { %v394_v63 = vpop.permute.xlu0 %393  ;;  %v396_v0 = vpop.permute.xlu1 %395 }
 0x170   :  { %v416_v2 = vsel %vm59_vm1, %v2516_v29, %v394_v63  ;;  %v417_v3 = vsel %vm59_vm1, %v314_v35, %v396_v0 }
 0x171   :  { %2543 = vmatmul.mubr.msk.f32.vlgmr.msra.gmra.mrb[8].mxu0 %vm427_vm2, %v416_v2 }
 0x172   :  { %2545 = vmatprep.mubr.msk.f32.mxu0 %vm427_vm2, %v417_v3  ;;  %2844 = vmatpush3.bf16.msra.mxu0 %v2841_v47 }
 0x173   :  { %v398_v6 = vpop.permute.xlu1 %397  ;;  %v400_v7 = vpop.permute.xlu0 %399  ;;  %2846 = vmatprep.subr.bf16.mxu0 %v2845_v1 }
 0x174   :  { %v418_v10 = vsel %vm59_vm1, %v2519_v33, %v398_v6  ;;  %v419_v11 = vsel %vm59_vm1, %v324_v37, %v400_v7  ;;  %v51_v33 = vld [vmem:[%s3617_s3 + $0x50] sm:$0xff] }
 0x175   :  { %2546 = vmatmul.mubr.msk.f32.gmra.mrb[10].mxu0 %vm427_vm2, %v418_v10  ;;  %v2853_v35 = vpack.c.bf16 %v52_v34, %v51_v33  ;;  %v751_v6 = vld [vmem:[%s3617_s3 + $0x70] sm:$0xff]  ;;  %v753_v10 = vld [vmem:[%s3617_s3 + $0x80] sm:$0xff] }
 0x176   :  { %2548 = vmatprep.mubr.msk.f32.mxu0 %vm427_vm2, %v419_v11  ;;  %2848 = vmatpush3.bf16.msra.mxu0 %v2845_v1  ;;  %v2857_v7 = vpack.c.bf16 %v751_v6, %v750_v5 }
 0x177   :  { %v402_v12 = vpop.permute.xlu1 %401  ;;  %v404_v28 = vpop.permute.xlu0 %403  ;;  %2850 = vmatprep.subr.bf16.mxu0 %v2849_v9 }
 0x178   :  { %v420_v29 = vsel %vm59_vm1, %v2522_v36, %v402_v12  ;;  %v421_v30 = vsel %vm59_vm1, %v334_v39, %v404_v28  ;;  %v2184_v36 = vld [vmem:[%s3617_s3] ss:$0 sm:$0xff]  ;;  %2858 = vmatprep.subr.bf16.mxu1 %v2857_v7  ;;  %v2159_v12 = vld [vmem:[%s3617_s3 + $0x1] ss:$0 sm:$0xff] }
 0x179   :  { %2549 = vmatmul.mubr.msk.f32.gmra.mrb[12].mxu0 %vm427_vm2, %v420_v29  ;;  %2860 = vmatpush3.bf16.msra.mxu1 %v2857_v7  ;;  %v156_v28 = vadd.f32 %v3195_v51, %v2159_v12  ;;  %v151_v29 = vadd.f32 %v2159_v12, %v3197_v52  ;;  %v166_v34 = vadd.f32 %v3199_v53, %v2159_v12 }
 0x17a   :  { %2551 = vmatprep.mubr.msk.f32.mxu0 %vm427_vm2, %v421_v30  ;;  %2852 = vmatpush3.bf16.msra.mxu0 %v2849_v9  ;;  %v752_v9 = vld [vmem:[%s3617_s3 + $0x78] sm:$0xff]  ;;  %v176_v52 = vadd.f32 %v3203_v55, %v2159_v12 }
 0x17b   :  { %v406_v31 = vpop.permute.xlu1 %405  ;;  %2854 = vmatprep.subr.bf16.mxu0 %v2853_v35  ;;  %v2861_v11 = vpack.c.bf16 %v753_v10, %v752_v9 }
 0x17c   :  { %v422_v32 = vsel %vm59_vm1, %v3187_v38, %v406_v31 }
 0x17d   :  { %2552 = vmatmul.mubr.msk.f32.gmra.mrb[14].mxu0 %vm427_vm2, %v422_v32  ;;  %2862 = vmatprep.subr.bf16.mxu1 %v2861_v11 }
 0x17e   :  { %2856 = vmatpush3.bf16.msra.mxu0 %v2853_v35  ;;  %2864 = vmatpush3.bf16.msra.mxu1 %v2861_v11  ;;  %v161_v35 = vadd.f32 %v2159_v12, %v3201_v54  ;;  %v186_v54 = vadd.f32 %v3207_v58, %v2159_v12 }
 0x244   :  { %v2544_v37 = vpop.f32.mrb[8].mxu0 }
 0x245   :  { %v524_v39 = vadd.f32 %v2544_v37, %v2184_v36  ;;  %v518_v38 = vpop.f32.mrb[9].mxu0 }
 0x246   :  { %v519_v40 = vadd.f32 %v2184_v36, %v518_v38  ;;  %v171_v38 = vadd.f32 %v2159_v12, %v3205_v56 }
 0x247   :  { %v558_v43 = vmax.f32 %v524_v39, 0.0 }
 0x248   :  { %v557_v41 = vmax.f32 %v519_v40, 0.0  ;;  %v2547_v42 = vpop.f32.mrb[10].mxu0 }
 0x249   :  { %v534_v44 = vadd.f32 %v2547_v42, %v2184_v36  ;;  %v528_v45 = vpop.f32.mrb[11].mxu0 }
 0x24a   :  { %v529_v46 = vadd.f32 %v2184_v36, %v528_v45  ;;  %2570 = vmatprep.mubr.msk.f32.mxu0 %vm189_vm0, %v557_v41 }
 0x24b   :  { %2571 = vmatmul.mubr.msk.f32.vlgmr.msra.gmra.mrb[16].mxu0 %vm189_vm0, %v558_v43  ;;  %v560_v49 = vmax.f32 %v534_v44, 0.0  ;;  %v181_v43 = vadd.f32 %v2159_v12, %v3216_v62 }
 0x24c   :  { %v559_v47 = vmax.f32 %v529_v46, 0.0  ;;  %v2550_v48 = vpop.f32.mrb[12].mxu0 }
 0x24d   :  { %v544_v50 = vadd.f32 %v2550_v48, %v2184_v36  ;;  %v538_v57 = vpop.f32.mrb[13].mxu0 }
 0x24e   :  { %v539_v59 = vadd.f32 %v2184_v36, %v538_v57  ;;  %2573 = vmatprep.mubr.msk.f32.mxu0 %vm189_vm0, %v559_v47 }
 0x24f   :  { %2574 = vmatmul.mubr.msk.f32.gmra.mrb[18].mxu0 %vm189_vm0, %v560_v49  ;;  %v562_v63 = vmax.f32 %v544_v50, 0.0 }
 0x250   :  { %v561_v60 = vmax.f32 %v539_v59, 0.0  ;;  %v2553_v61 = vpop.f32.mrb[14].mxu0 }
 0x251   :  { %v554_v0 = vadd.f32 %v2553_v61, %v2184_v36  ;;  %v548_v1 = vpop.f32.mrb[15].mxu0 }
 0x252   :  { %v549_v2 = vadd.f32 %v2184_v36, %v548_v1  ;;  %2576 = vmatprep.mubr.msk.f32.mxu0 %vm189_vm0, %v561_v60 }
 0x253   :  { %2577 = vmatmul.mubr.msk.f32.gmra.mrb[20].mxu0 %vm189_vm0, %v562_v63  ;;  %v564_v4 = vmax.f32 %v554_v0, 0.0 }
 0x254   :  { %v563_v3 = vmax.f32 %v549_v2, 0.0 }
 0x256   :  { %2579 = vmatprep.mubr.msk.f32.mxu0 %vm189_vm0, %v563_v3 }
 0x257   :  { %2580 = vmatmul.mubr.msk.f32.gmra.mrb[22].mxu0 %vm189_vm0, %v564_v4 }
 0x258   :  { %2618 = vmatprep.mubr.msk.f32.mxu0 %vm189_vm0, %v3055_v8 }
 0x31e   :  { %v2572_v30 = vpop.f32.mrb[16].mxu0 }
 0x31f   :  { %v695_v31 = vadd.f32 %v2572_v30, %v156_v28  ;;  %712 = vrot.lane.b32.xlu1 %v2572_v30, %s3002_s15  ;;  %v655_v32 = vpop.f32.mrb[17].mxu0 }
 0x320   :  { %v694_v33 = vadd.f32 %v655_v32, %v151_v29  ;;  %710 = vrot.lane.b32.xlu0 %v655_v32, %s3002_s15  ;;  %v754_v32 = vld [vmem:[%s3617_s3 + $0x88] sm:$0xff] }
 0x322   :  { %v2575_v36 = vpop.f32.mrb[18].mxu0 }
 0x323   :  { %v697_v37 = vadd.f32 %v2575_v36, %v166_v34  ;;  %716 = vrot.lane.b32.xlu1 %v2575_v36, %s3002_s15  ;;  %v665_v51 = vpop.f32.mrb[19].mxu0  ;;  %v756_v34 = vld [vmem:[%s3617_s3 + $0x98] sm:$0xff]  ;;  %v757_v36 = vld [vmem:[%s3617_s3 + $0xa0] sm:$0xff] }
 0x324   :  { %v696_v39 = vadd.f32 %v665_v51, %v161_v35  ;;  %714 = vrot.lane.b32.xlu0 %v665_v51, %s3002_s15  ;;  %v758_v51 = vld [vmem:[%s3617_s3 + $0xa8] sm:$0xff] }
 0x326   :  { %v2578_v40 = vpop.f32.mrb[20].mxu0 }
 0x327   :  { %v699_v41 = vadd.f32 %v2578_v40, %v176_v52  ;;  %720 = vrot.lane.b32.xlu1 %v2578_v40, %s3002_s15  ;;  %v675_v42 = vpop.f32.mrb[21].mxu0  ;;  %v761_v40 = vld [vmem:[%s3617_s3 + $0xc0] sm:$0xff] }
 0x328   :  { %v698_v53 = vadd.f32 %v675_v42, %v171_v38  ;;  %718 = vrot.lane.b32.xlu0 %v675_v42, %s3002_s15  ;;  %v760_v38 = vld [vmem:[%s3617_s3 + $0xb8] sm:$0xff] }
 0x32a   :  { %v2581_v44 = vpop.f32.mrb[22].mxu0 }
 0x32b   :  { %v701_v45 = vadd.f32 %v2581_v44, %v186_v54  ;;  %724 = vrot.lane.b32.xlu1 %v2581_v44, %s3002_s15  ;;  %v685_v46 = vpop.f32.mrb[23].mxu0 }
 0x32c   :  { %v700_v55 = vadd.f32 %v685_v46, %v181_v43  ;;  %722 = vrot.lane.b32.xlu0 %v685_v46, %s3002_s15 }
 0x391   :  { %v713_v56 = vpop.permute.xlu1 %712 }
 0x392   :  { %v735_v47 = vadd.f32 %v713_v56, %v695_v31  ;;  %v711_v48 = vpop.permute.xlu0 %710 }
 0x393   :  { %v734_v49 = vadd.f32 %v711_v48, %v694_v33  ;;  %v755_v33 = vld [vmem:[%s3617_s3 + $0x90] sm:$0xff] }
 0x394   :  { %v743_v50 = vmax.f32 %v735_v47, 0.0  ;;  %v2881_v35 = vpack.c.bf16 %v755_v33, %v754_v32 }
 0x395   :  { %v742_v57 = vmax.f32 %v734_v49, 0.0  ;;  %v717_v59 = vpop.permute.xlu1 %716 }
 0x396   :  { %v737_v60 = vadd.f32 %v717_v59, %v697_v37  ;;  %v715_v58 = vpop.permute.xlu0 %714  ;;  %v2885_v37 = vpack.c.bf16 %v757_v36, %v756_v34  ;;  %2882 = vmatprep.subr.bf16.mxu1 %v2881_v35 }
 0x397   :  { %v2865_v61 = vpack.c.bf16 %v743_v50, %v742_v57  ;;  %v736_v62 = vadd.f32 %v715_v58, %v696_v39  ;;  %2590 = vmatprep.mubr.msk.f32.mxu1 %vm776_vm3, %v742_v57  ;;  %v759_v39 = vld [vmem:[%s3617_s3 + $0xb0] sm:$0xff] }
 0x398   :  { %v745_v63 = vmax.f32 %v737_v60, 0.0  ;;  %2591 = vmatmul.mubr.msk.f32.vlgmr.msra.gmra.mrb[16].mxu1 %vm776_vm3, %v743_v50  ;;  %v2889_v52 = vpack.c.bf16 %v759_v39, %v758_v51 }
 0x399   :  { %v744_v0 = vmax.f32 %v736_v62, 0.0  ;;  %2866 = vmatprep.subr.bf16.mxu0 %v2865_v61  ;;  %v721_v1 = vpop.permute.xlu1 %720  ;;  %2884 = vmatpush3.bf16.msra.mxu1 %v2881_v35  ;;  %v762_v62 = vld [vmem:[%s3617_s3 + $0xc8] sm:$0xff] }
 0x39a   :  { %v739_v2 = vadd.f32 %v721_v1, %v699_v41  ;;  %2868 = vmatpush3.bf16.msra.mxu0 %v2865_v61  ;;  %v719_v3 = vpop.permute.xlu0 %718  ;;  %2886 = vmatprep.subr.bf16.mxu1 %v2885_v37  ;;  %v2893_v41 = vpack.c.bf16 %v761_v40, %v760_v38 }
 0x39b   :  { %v2869_v4 = vpack.c.bf16 %v745_v63, %v744_v0  ;;  %v738_v5 = vadd.f32 %v719_v3, %v698_v53  ;;  %2593 = vmatprep.mubr.msk.f32.mxu1 %vm776_vm3, %v744_v0 }
 0x39c   :  { %v747_v6 = vmax.f32 %v739_v2, 0.0  ;;  %2594 = vmatmul.mubr.msk.f32.gmra.mrb[18].mxu1 %vm776_vm3, %v745_v63  ;;  %v763_v63 = vld [vmem:[%s3617_s3 + $0xd0] sm:$0xff] }
 0x39d   :  { %v746_v7 = vmax.f32 %v738_v5, 0.0  ;;  %2870 = vmatprep.subr.bf16.mxu0 %v2869_v4  ;;  %v725_v9 = vpop.permute.xlu1 %724  ;;  %2888 = vmatpush3.bf16.msra.mxu1 %v2885_v37  ;;  %v2897_v1 = vpack.c.bf16 %v763_v63, %v762_v62 }
 0x39e   :  { %v741_v10 = vadd.f32 %v725_v9, %v701_v45  ;;  %2872 = vmatpush3.bf16.msra.mxu0 %v2869_v4  ;;  %v723_v11 = vpop.permute.xlu0 %722  ;;  %2890 = vmatprep.subr.bf16.mxu1 %v2889_v52  ;;  %v765_v9 = vld [vmem:[%s3617_s3 + $0xe0] sm:$0xff] }
 0x39f   :  { %v2873_v12 = vpack.c.bf16 %v747_v6, %v746_v7  ;;  %v740_v28 = vadd.f32 %v723_v11, %v700_v55  ;;  %2596 = vmatprep.mubr.msk.f32.mxu1 %vm776_vm3, %v746_v7  ;;  %v764_v7 = vld [vmem:[%s3617_s3 + $0xd8] sm:$0xff] }
 0x3a0   :  { %v749_v29 = vmax.f32 %v741_v10, 0.0  ;;  %2597 = vmatmul.mubr.msk.f32.gmra.mrb[20].mxu1 %vm776_vm3, %v747_v6 }
 0x3a1   :  { %v748_v30 = vmax.f32 %v740_v28, 0.0  ;;  %2874 = vmatprep.subr.bf16.mxu0 %v2873_v12  ;;  %2892 = vmatpush3.bf16.msra.mxu1 %v2889_v52  ;;  %v2901_v28 = vpack.c.bf16 %v765_v9, %v764_v7 }
 0x3a2   :  { %2876 = vmatpush3.bf16.msra.mxu0 %v2873_v12  ;;  %2894 = vmatprep.subr.bf16.mxu1 %v2893_v41 }
 0x3a3   :  { %v2877_v31 = vpack.c.bf16 %v749_v29, %v748_v30  ;;  %2599 = vmatprep.mubr.msk.f32.mxu1 %vm776_vm3, %v748_v30  ;;  %v766_v30 = vld [vmem:[%s3617_s3 + $0xe8] sm:$0xff] }
 0x3a4   :  { %2600 = vmatmul.mubr.msk.f32.gmra.mrb[22].mxu1 %vm776_vm3, %v749_v29 }
 0x3a5   :  { %2878 = vmatprep.subr.bf16.mxu0 %v2877_v31  ;;  %2896 = vmatpush3.bf16.msra.mxu1 %v2893_v41 }
 0x3a6   :  { %2880 = vmatpush3.bf16.msra.mxu0 %v2877_v31  ;;  %2898 = vmatprep.subr.bf16.mxu1 %v2897_v1  ;;  %v767_v31 = vld [vmem:[%s3617_s3 + $0xf0] sm:$0xff] }
 0x3a7   :  { %v2905_v35 = vpack.c.bf16 %v767_v31, %v766_v30 }
 0x3a9   :  { %2619 = vmatmul.mubr.msk.f32.vlgmr.msra.gmra.mrb[24].mxu0 %vm189_vm0, %v3068_v13 }
 0x3aa   :  { %2621 = vmatprep.mubr.msk.f32.mxu0 %vm189_vm0, %v3073_v14 }
 0x3ad   :  { %2622 = vmatmul.mubr.msk.f32.gmra.mrb[26].mxu0 %vm189_vm0, %v3082_v15 }
 0x3ae   :  { %2624 = vmatprep.mubr.msk.f32.mxu0 %vm189_vm0, %v3087_v16 }
 0x3b1   :  { %2625 = vmatmul.mubr.msk.f32.gmra.mrb[28].mxu0 %vm189_vm0, %v3096_v17 }
 0x3b2   :  { %2627 = vmatprep.mubr.msk.f32.mxu0 %vm189_vm0, %v3101_v18 }
 0x3b5   :  { %2628 = vmatmul.mubr.msk.f32.gmra.mrb[30].mxu0 %vm189_vm0, %v3110_v19 }
 0x3b6   :  { %2630 = vmatprep.mubr.msk.f32.mxu0 %vm189_vm0, %v3115_v20 }
 0x3b9   :  { %2631 = vmatmul.mubr.msk.f32.gmra.mrb[32].mxu0 %vm189_vm0, %v3124_v21 }
 0x3ba   :  { %2633 = vmatprep.mubr.msk.f32.mxu0 %vm189_vm0, %v3129_v22 }
 0x3bd   :  { %2634 = vmatmul.mubr.msk.f32.gmra.mrb[34].mxu0 %vm189_vm0, %v3138_v23 }
 0x3be   :  { %2636 = vmatprep.mubr.msk.f32.mxu0 %vm189_vm0, %v3143_v24 }
 0x3c1   :  { %2637 = vmatmul.mubr.msk.f32.gmra.mrb[36].mxu0 %vm189_vm0, %v3152_v25 }
 0x3c2   :  { %2639 = vmatprep.mubr.msk.f32.mxu0 %vm189_vm0, %v3157_v26 }
 0x3c5   :  { %2640 = vmatmul.mubr.msk.f32.gmra.mrb[38].mxu0 %vm189_vm0, %v3166_v27 }
 0x46b   :  { %v3352_v42 = vpop.f32.mrb[16].mxu1 }
 0x46c   :  { %v3354_v53 = vpop.f32.mrb[17].mxu1 }
 0x46f   :  { %v3356_v54 = vpop.f32.mrb[18].mxu1 }
 0x470   :  { %v3358_v43 = vpop.f32.mrb[19].mxu1 }
 0x473   :  { %v3360_v44 = vpop.f32.mrb[20].mxu1 }
 0x474   :  { %v3362_v45 = vpop.f32.mrb[21].mxu1 }
 0x477   :  { %v3364_v46 = vpop.f32.mrb[22].mxu1 }
 0x478   :  { %v3366_v55 = vpop.f32.mrb[23].mxu1 }
 0x47c   :  { %v2620_v56 = vpop.f32.mrb[24].mxu0 }
 0x47d   :  { %v972_v47 = vpop.f32.mrb[25].mxu0 }
 0x480   :  { %v2623_v48 = vpop.f32.mrb[26].mxu0 }
 0x481   :  { %v982_v49 = vpop.f32.mrb[27].mxu0 }
 0x484   :  { %v2626_v50 = vpop.f32.mrb[28].mxu0 }
 0x485   :  { %v992_v57 = vpop.f32.mrb[29].mxu0 }
 0x488   :  { %v2629_v59 = vpop.f32.mrb[30].mxu0 }
 0x489   :  { %v1002_v60 = vpop.f32.mrb[31].mxu0 }
 0x48c   :  { %v2632_v58 = vpop.f32.mrb[32].mxu0 }
 0x48d   :  { %1061 = vrot.lane.b32.xlu1 %v2632_v58, %s3003_s6  ;;  %v1012_v61 = vpop.f32.mrb[33].mxu0 }
 0x48e   :  { %1059 = vrot.lane.b32.xlu0 %v1012_v61, %s3003_s6 }
 0x490   :  { %v2635_v0 = vpop.f32.mrb[34].mxu0 }
 0x491   :  { %1065 = vrot.lane.b32.xlu1 %v2635_v0, %s3003_s6  ;;  %v1022_v2 = vpop.f32.mrb[35].mxu0 }
 0x492   :  { %1063 = vrot.lane.b32.xlu0 %v1022_v2, %s3003_s6 }
 0x494   :  { %v2638_v3 = vpop.f32.mrb[36].mxu0 }
 0x495   :  { %1069 = vrot.lane.b32.xlu1 %v2638_v3, %s3003_s6  ;;  %v1032_v4 = vpop.f32.mrb[37].mxu0 }
 0x496   :  { %1067 = vrot.lane.b32.xlu0 %v1032_v4, %s3003_s6 }
 0x498   :  { %v2641_v5 = vpop.f32.mrb[38].mxu0 }
 0x499   :  { %1073 = vrot.lane.b32.xlu1 %v2641_v5, %s3003_s6  ;;  %v1042_v6 = vpop.f32.mrb[39].mxu0 }
 0x49a   :  { %1071 = vrot.lane.b32.xlu0 %v1042_v6, %s3003_s6 }
 0x4ff   :  { %v1062_v10 = vpop.permute.xlu1 %1061 }
 0x500   :  { %v1060_v11 = vpop.permute.xlu0 %1059  ;;  %v1084_v29 = vsel %vm776_vm3, %v2620_v56, %v1062_v10 }
 0x501   :  { %v1083_v12 = vsel %vm776_vm3, %v972_v47, %v1060_v11  ;;  %v768_v47 = vld [vmem:[%s3617_s3 + $0xf8] sm:$0xff] }
 0x502   :  { %2658 = vmatprep.mubr.msk.f32.mxu1 %vm189_vm0, %v1083_v12 }
 0x503   :  { %v1066_v32 = vpop.permute.xlu1 %1065  ;;  %2659 = vmatmul.mubr.msk.f32.vlgmr.msra.gmra.mrb[24].mxu1 %vm189_vm0, %v1084_v29 }
 0x504   :  { %v1064_v33 = vpop.permute.xlu0 %1063  ;;  %2900 = vmatpush3.bf16.msra.mxu1 %v2897_v1  ;;  %v1086_v36 = vsel %vm776_vm3, %v2623_v48, %v1066_v32  ;;  %v769_v48 = vld [vmem:[%s3617_s3 + $0x100] sm:$0xff] }
 0x505   :  { %v1085_v34 = vsel %vm776_vm3, %v982_v49, %v1064_v33  ;;  %2902 = vmatprep.subr.bf16.mxu1 %v2901_v28  ;;  %v2909_v49 = vpack.c.bf16 %v769_v48, %v768_v47  ;;  %v1417_v33 = vld [vmem:[%s3617_s3 + $0x110] sm:$0xff] }
 0x506   :  { %2661 = vmatprep.mubr.msk.f32.mxu1 %vm189_vm0, %v1085_v34  ;;  %v1418_v34 = vld [vmem:[%s3617_s3 + $0x118] sm:$0xff] }
 0x507   :  { %v1070_v37 = vpop.permute.xlu1 %1069  ;;  %2662 = vmatmul.mubr.msk.f32.gmra.mrb[26].mxu1 %vm189_vm0, %v1086_v36  ;;  %v1419_v36 = vld [vmem:[%s3617_s3 + $0x120] sm:$0xff] }
 0x508   :  { %v1068_v51 = vpop.permute.xlu0 %1067  ;;  %2904 = vmatpush3.bf16.msra.mxu1 %v2901_v28  ;;  %v1088_v52 = vsel %vm776_vm3, %v2626_v50, %v1070_v37  ;;  %v2226_v50 = vld [vmem:[%s3617_s3 + $0x60] ss:$0 sm:$0xff]  ;;  %v1420_v37 = vld [vmem:[%s3617_s3 + $0x128] sm:$0xff] }
 0x509   :  { %v1087_v39 = vsel %vm776_vm3, %v992_v57, %v1068_v51  ;;  %2906 = vmatprep.subr.bf16.mxu1 %v2905_v35  ;;  %v2201_v51 = vld [vmem:[%s3617_s3 + $0x61] ss:$0 sm:$0xff] }
 0x50a   :  { %2664 = vmatprep.mubr.msk.f32.mxu1 %vm189_vm0, %v1087_v39  ;;  %v873_v39 = vadd.f32 %v3352_v42, %v2201_v51  ;;  %v883_v47 = vadd.f32 %v3356_v54, %v2201_v51  ;;  %v878_v48 = vadd.f32 %v2201_v51, %v3358_v43  ;;  %v903_v43 = vadd.f32 %v3364_v46, %v2201_v51 }
 0x50b   :  { %v1074_v38 = vpop.permute.xlu1 %1073  ;;  %2665 = vmatmul.mubr.msk.f32.gmra.mrb[28].mxu1 %vm189_vm0, %v1088_v52  ;;  %v868_v52 = vadd.f32 %v2201_v51, %v3354_v53  ;;  %v893_v53 = vadd.f32 %v3360_v44, %v2201_v51 }
 0x50c   :  { %v1072_v40 = vpop.permute.xlu0 %1071  ;;  %2908 = vmatpush3.bf16.msra.mxu1 %v2905_v35  ;;  %v1090_v56 = vsel %vm776_vm3, %v2629_v59, %v1074_v38  ;;  %v2913_v35 = vpack.c.bf16 %v1418_v34, %v1417_v33 }
 0x50d   :  { %v1089_v41 = vsel %vm776_vm3, %v1002_v60, %v1072_v40  ;;  %2910 = vmatprep.subr.bf16.mxu1 %v2909_v49 }
 0x50e   :  { %2667 = vmatprep.mubr.msk.f32.mxu1 %vm189_vm0, %v1089_v41  ;;  %2914 = vmatprep.subr.bf16.mxu0 %v2913_v35 }
 0x50f   :  { %2668 = vmatmul.mubr.msk.f32.gmra.mrb[30].mxu1 %vm189_vm0, %v1090_v56  ;;  %2916 = vmatpush3.bf16.msra.mxu0 %v2913_v35 }
 0x510   :  { %2912 = vmatpush3.bf16.msra.mxu1 %v2909_v49 }
 0x5d6   :  { %v2660_v57 = vpop.f32.mrb[24].mxu1 }
 0x5d7   :  { %v1191_v59 = vadd.f32 %v2660_v57, %v2226_v50  ;;  %v1185_v60 = vpop.f32.mrb[25].mxu1 }
 0x5d8   :  { %v1186_v58 = vadd.f32 %v2226_v50, %v1185_v60 }
 0x5d9   :  { %v1225_v63 = vmax.f32 %v1191_v59, 0.0  ;;  %v888_v59 = vadd.f32 %v2201_v51, %v3362_v45 }
 0x5da   :  { %v1224_v61 = vmax.f32 %v1186_v58, 0.0  ;;  %v2663_v62 = vpop.f32.mrb[26].mxu1 }
 0x5db   :  { %v1201_v0 = vadd.f32 %v2663_v62, %v2226_v50  ;;  %v1195_v1 = vpop.f32.mrb[27].mxu1  ;;  %v898_v62 = vadd.f32 %v2201_v51, %v3366_v55 }
 0x5dc   :  { %v1196_v2 = vadd.f32 %v2226_v50, %v1195_v1  ;;  %2686 = vmatprep.mubr.msk.f32.mxu1 %vm189_vm0, %v1224_v61 }
 0x5dd   :  { %2687 = vmatmul.mubr.msk.f32.vlgmr.msra.gmra.mrb[32].mxu1 %vm189_vm0, %v1225_v63  ;;  %v1227_v5 = vmax.f32 %v1201_v0, 0.0 }
 0x5de   :  { %v1226_v3 = vmax.f32 %v1196_v2, 0.0  ;;  %v2666_v4 = vpop.f32.mrb[28].mxu1 }
 0x5df   :  { %v1211_v6 = vadd.f32 %v2666_v4, %v2226_v50  ;;  %v1205_v7 = vpop.f32.mrb[29].mxu1 }
 0x5e0   :  { %v1206_v9 = vadd.f32 %v2226_v50, %v1205_v7  ;;  %2689 = vmatprep.mubr.msk.f32.mxu1 %vm189_vm0, %v1226_v3 }
 0x5e1   :  { %2690 = vmatmul.mubr.msk.f32.gmra.mrb[34].mxu1 %vm189_vm0, %v1227_v5  ;;  %v1229_v12 = vmax.f32 %v1211_v6, 0.0 }
 0x5e2   :  { %v1228_v10 = vmax.f32 %v1206_v9, 0.0  ;;  %v2669_v11 = vpop.f32.mrb[30].mxu1 }
 0x5e3   :  { %v1221_v28 = vadd.f32 %v2669_v11, %v2226_v50  ;;  %v1215_v29 = vpop.f32.mrb[31].mxu1 }
 0x5e4   :  { %v1216_v30 = vadd.f32 %v2226_v50, %v1215_v29  ;;  %2692 = vmatprep.mubr.msk.f32.mxu1 %vm189_vm0, %v1228_v10 }
 0x5e5   :  { %2693 = vmatmul.mubr.msk.f32.gmra.mrb[36].mxu1 %vm189_vm0, %v1229_v12  ;;  %v1231_v32 = vmax.f32 %v1221_v28, 0.0 }
 0x5e6   :  { %v1230_v31 = vmax.f32 %v1216_v30, 0.0 }
 0x5e8   :  { %2695 = vmatprep.mubr.msk.f32.mxu1 %vm189_vm0, %v1230_v31 }
 0x5e9   :  { %2696 = vmatmul.mubr.msk.f32.gmra.mrb[38].mxu1 %vm189_vm0, %v1231_v32 }
 0x5ea   :  { %2734 = vmatprep.mubr.msk.f32.mxu1 %vm189_vm0, %v3055_v8  ;;  %v2917_v8 = vpack.c.bf16 %v1420_v37, %v1419_v36 }
 0x5ec   :  { %2918 = vmatprep.subr.bf16.mxu0 %v2917_v8 }
 0x5ed   :  { %2920 = vmatpush3.bf16.msra.mxu0 %v2917_v8 }
 0x6b0   :  { %v2688_v38 = vpop.f32.mrb[32].mxu1 }
 0x6b1   :  { %v1362_v40 = vadd.f32 %v2688_v38, %v873_v39  ;;  %1379 = vrot.lane.b32.xlu1 %v2688_v38, %s3002_s15  ;;  %v1322_v41 = vpop.f32.mrb[33].mxu1 }
 0x6b2   :  { %v1361_v56 = vadd.f32 %v1322_v41, %v868_v52  ;;  %1377 = vrot.lane.b32.xlu0 %v1322_v41, %s3002_s15 }
 0x6b4   :  { %v2691_v49 = vpop.f32.mrb[34].mxu1 }
 0x6b5   :  { %v1364_v50 = vadd.f32 %v2691_v49, %v883_v47  ;;  %1383 = vrot.lane.b32.xlu1 %v2691_v49, %s3002_s15  ;;  %v1332_v57 = vpop.f32.mrb[35].mxu1 }
 0x6b6   :  { %v1363_v42 = vadd.f32 %v1332_v57, %v878_v48  ;;  %1381 = vrot.lane.b32.xlu0 %v1332_v57, %s3002_s15 }
 0x6b8   :  { %v2694_v60 = vpop.f32.mrb[36].mxu1 }
 0x6b9   :  { %v1366_v58 = vadd.f32 %v2694_v60, %v893_v53  ;;  %1387 = vrot.lane.b32.xlu1 %v2694_v60, %s3002_s15  ;;  %v1342_v61 = vpop.f32.mrb[37].mxu1 }
 0x6ba   :  { %v1365_v54 = vadd.f32 %v1342_v61, %v888_v59  ;;  %1385 = vrot.lane.b32.xlu0 %v1342_v61, %s3002_s15 }
 0x6bc   :  { %v2697_v63 = vpop.f32.mrb[38].mxu1 }
 0x6bd   :  { %v1368_v0 = vadd.f32 %v2697_v63, %v903_v43  ;;  %1391 = vrot.lane.b32.xlu1 %v2697_v63, %s3002_s15  ;;  %v1352_v1 = vpop.f32.mrb[39].mxu1 }
 0x6be   :  { %v1367_v44 = vadd.f32 %v1352_v1, %v898_v62  ;;  %1389 = vrot.lane.b32.xlu0 %v1352_v1, %s3002_s15  ;;  %s2977_s15 = scalar_lea.vmem %s2152_s8, 64 }
 0x6bf   :  { %p2978_p0 = scmp.ne.s32.totalorder %s2152_s8, %s2977_s15  ;;  %p2983_p2 = scmp.lt.s32.totalorder %s2977_s15, %s2977_s15 }
 0x6c1   :  { %p2984_p3 = por %p2983_p2, %p2982_p1 }
 0x6c3   :  { %p2985_p4 = pnand %p2984_p3, %p2978_p0 }
 0x723   :  { %v1380_v45 = vpop.permute.xlu1 %1379 }
 0x724   :  { %v1402_v2 = vadd.f32 %v1380_v45, %v1362_v40  ;;  %v1378_v3 = vpop.permute.xlu0 %1377 }
 0x725   :  { %v1401_v4 = vadd.f32 %v1378_v3, %v1361_v56 }
 0x726   :  { %v1410_v5 = vmax.f32 %v1402_v2, 0.0 }
 0x727   :  { %v1409_v6 = vmax.f32 %v1401_v4, 0.0  ;;  %v1384_v7 = vpop.permute.xlu1 %1383 }
 0x728   :  { %v1404_v9 = vadd.f32 %v1384_v7, %v1364_v50  ;;  %v1382_v10 = vpop.permute.xlu0 %1381 }
 0x729   :  { %v2921_v46 = vpack.c.bf16 %v1410_v5, %v1409_v6  ;;  %v1403_v11 = vadd.f32 %v1382_v10, %v1363_v42  ;;  %2706 = vmatprep.mubr.msk.f32.mxu0 %vm776_vm3, %v1409_v6 }
 0x72a   :  { %v1412_v55 = vmax.f32 %v1404_v9, 0.0  ;;  %2707 = vmatmul.mubr.msk.f32.vlgmr.msra.gmra.mrb[40].mxu0 %vm776_vm3, %v1410_v5 }
 0x72b   :  { %v1411_v12 = vmax.f32 %v1403_v11, 0.0  ;;  %2922 = vmatprep.subr.bf16.mxu1 %v2921_v46  ;;  %v1388_v28 = vpop.permute.xlu1 %1387 }
 0x72c   :  { %v1406_v29 = vadd.f32 %v1388_v28, %v1366_v58  ;;  %2924 = vmatpush3.bf16.msra.mxu1 %v2921_v46  ;;  %v1386_v30 = vpop.permute.xlu0 %1385 }
 0x72d   :  { %v2925_v31 = vpack.c.bf16 %v1412_v55, %v1411_v12  ;;  %v1405_v32 = vadd.f32 %v1386_v30, %v1365_v54  ;;  %2709 = vmatprep.mubr.msk.f32.mxu0 %vm776_vm3, %v1411_v12 }
 0x72e   :  { %v1414_v33 = vmax.f32 %v1406_v29, 0.0  ;;  %2710 = vmatmul.mubr.msk.f32.gmra.mrb[42].mxu0 %vm776_vm3, %v1412_v55 }
 0x72f   :  { %v1413_v34 = vmax.f32 %v1405_v32, 0.0  ;;  %2926 = vmatprep.subr.bf16.mxu1 %v2925_v31  ;;  %v1392_v35 = vpop.permute.xlu1 %1391  ;;  %v1430_v32 = vld [vmem:[%s3617_s3 + $0x178] sm:$0xff] }
 0x730   :  { %v1408_v36 = vadd.f32 %v1392_v35, %v1368_v0  ;;  %2928 = vmatpush3.bf16.msra.mxu1 %v2925_v31  ;;  %v1390_v37 = vpop.permute.xlu0 %1389  ;;  %v1429_v31 = vld [vmem:[%s3617_s3 + $0x170] sm:$0xff] }
 0x731   :  { %v2929_v8 = vpack.c.bf16 %v1414_v33, %v1413_v34  ;;  %v1407_v51 = vadd.f32 %v1390_v37, %v1367_v44  ;;  %2712 = vmatprep.mubr.msk.f32.mxu0 %vm776_vm3, %v1413_v34  ;;  %v2268_v34 = vld [vmem:[%s3617_s3 + $0x108] ss:$0 sm:$0xff] }
 0x732   :  { %v1416_v39 = vmax.f32 %v1408_v36, 0.0  ;;  %2713 = vmatmul.mubr.msk.f32.gmra.mrb[44].mxu0 %vm776_vm3, %v1414_v33  ;;  %v2953_v33 = vpack.c.bf16 %v1430_v32, %v1429_v31 }
 0x733   :  { %v1415_v52 = vmax.f32 %v1407_v51, 0.0  ;;  %2930 = vmatprep.subr.bf16.mxu1 %v2929_v8 }
 0x734   :  { %2932 = vmatpush3.bf16.msra.mxu1 %v2929_v8 }
 0x735   :  { %v2933_v38 = vpack.c.bf16 %v1416_v39, %v1415_v52  ;;  %2715 = vmatprep.mubr.msk.f32.mxu0 %vm776_vm3, %v1415_v52 }
 0x736   :  { %2716 = vmatmul.mubr.msk.f32.gmra.mrb[46].mxu0 %vm776_vm3, %v1416_v39 }
 0x737   :  { %2934 = vmatprep.subr.bf16.mxu1 %v2933_v38 }
 0x738   :  { %2936 = vmatpush3.bf16.msra.mxu1 %v2933_v38 }
 0x73b   :  { %2735 = vmatmul.mubr.msk.f32.vlgmr.msra.gmra.mrb[40].mxu1 %vm189_vm0, %v3068_v13  ;;  %v1421_v13 = vld [vmem:[%s3617_s3 + $0x130] sm:$0xff] }
 0x73c   :  { %2737 = vmatprep.mubr.msk.f32.mxu1 %vm189_vm0, %v3073_v14  ;;  %v1422_v14 = vld [vmem:[%s3617_s3 + $0x138] sm:$0xff] }
 0x73f   :  { %2738 = vmatmul.mubr.msk.f32.gmra.mrb[42].mxu1 %vm189_vm0, %v3082_v15  ;;  %v1423_v15 = vld [vmem:[%s3617_s3 + $0x140] sm:$0xff] }
 0x740   :  { %2740 = vmatprep.mubr.msk.f32.mxu1 %vm189_vm0, %v3087_v16  ;;  %v2937_v16 = vpack.c.bf16 %v1422_v14, %v1421_v13 }
 0x742   :  { %2938 = vmatprep.subr.bf16.mxu0 %v2937_v16 }
 0x743   :  { %2741 = vmatmul.mubr.msk.f32.gmra.mrb[44].mxu1 %vm189_vm0, %v3096_v17  ;;  %v1424_v17 = vld [vmem:[%s3617_s3 + $0x148] sm:$0xff]  ;;  %2940 = vmatpush3.bf16.msra.mxu0 %v2937_v16 }
 0x744   :  { %2743 = vmatprep.mubr.msk.f32.mxu1 %vm189_vm0, %v3101_v18  ;;  %v2941_v18 = vpack.c.bf16 %v1424_v17, %v1423_v15 }
 0x746   :  { %2942 = vmatprep.subr.bf16.mxu0 %v2941_v18 }
 0x747   :  { %2744 = vmatmul.mubr.msk.f32.gmra.mrb[46].mxu1 %vm189_vm0, %v3110_v19  ;;  %v1425_v19 = vld [vmem:[%s3617_s3 + $0x150] sm:$0xff]  ;;  %2944 = vmatpush3.bf16.msra.mxu0 %v2941_v18 }
 0x748   :  { %2746 = vmatprep.mubr.msk.f32.mxu1 %vm189_vm0, %v3115_v20  ;;  %v1426_v20 = vld [vmem:[%s3617_s3 + $0x158] sm:$0xff] }
 0x74b   :  { %2747 = vmatmul.mubr.msk.f32.gmra.mrb[48].mxu1 %vm189_vm0, %v3124_v21  ;;  %v2945_v21 = vpack.c.bf16 %v1426_v20, %v1425_v19 }
 0x74c   :  { %2749 = vmatprep.mubr.msk.f32.mxu1 %vm189_vm0, %v3129_v22  ;;  %v1427_v22 = vld [vmem:[%s3617_s3 + $0x160] sm:$0xff] }
 0x74d   :  { %2946 = vmatprep.subr.bf16.mxu0 %v2945_v21 }
 0x74e   :  { %2948 = vmatpush3.bf16.msra.mxu0 %v2945_v21 }
 0x74f   :  { %2750 = vmatmul.mubr.msk.f32.gmra.mrb[50].mxu1 %vm189_vm0, %v3138_v23  ;;  %v1428_v23 = vld [vmem:[%s3617_s3 + $0x168] sm:$0xff] }
 0x750   :  { %2752 = vmatprep.mubr.msk.f32.mxu1 %vm189_vm0, %v3143_v24  ;;  %v2949_v24 = vpack.c.bf16 %v1428_v23, %v1427_v22 }
 0x752   :  { %2950 = vmatprep.subr.bf16.mxu0 %v2949_v24 }
 0x753   :  { %2753 = vmatmul.mubr.msk.f32.gmra.mrb[52].mxu1 %vm189_vm0, %v3152_v25  ;;  %2952 = vmatpush3.bf16.msra.mxu0 %v2949_v24 }
 0x754   :  { %2755 = vmatprep.mubr.msk.f32.mxu1 %vm189_vm0, %v3157_v26  ;;  %2954 = vmatprep.subr.bf16.mxu0 %v2953_v33 }
 0x757   :  { %2756 = vmatmul.mubr.msk.f32.gmra.mrb[54].mxu1 %vm189_vm0, %v3166_v27 }
 0x7fd   :  { %v3522_v25 = vpop.f32.mrb[40].mxu0 }
 0x7fe   :  { %v3524_v26 = vpop.f32.mrb[41].mxu0 }
 0x801   :  { %v3526_v27 = vpop.f32.mrb[42].mxu0 }
 0x802   :  { %v3528_v40 = vpop.f32.mrb[43].mxu0 }
 0x805   :  { %v3530_v41 = vpop.f32.mrb[44].mxu0 }
 0x806   :  { %v3532_v56 = vpop.f32.mrb[45].mxu0 }
 0x809   :  { %v3534_v47 = vpop.f32.mrb[46].mxu0 }
 0x80a   :  { %v3536_v48 = vpop.f32.mrb[47].mxu0 }
 0x80e   :  { %v2736_v49 = vpop.f32.mrb[40].mxu1 }
 0x80f   :  { %v1632_v50 = vpop.f32.mrb[41].mxu1 }
 0x812   :  { %v2739_v57 = vpop.f32.mrb[42].mxu1 }
 0x813   :  { %v1642_v42 = vpop.f32.mrb[43].mxu1 }
 0x816   :  { %v2742_v53 = vpop.f32.mrb[44].mxu1 }
 0x817   :  { %v1652_v59 = vpop.f32.mrb[45].mxu1 }
 0x81a   :  { %v2745_v60 = vpop.f32.mrb[46].mxu1 }
 0x81b   :  { %v1662_v58 = vpop.f32.mrb[47].mxu1 }
 0x81e   :  { %v2748_v61 = vpop.f32.mrb[48].mxu1 }
 0x81f   :  { %1721 = vrot.lane.b32.xlu1 %v2748_v61, %s3003_s6  ;;  %v1672_v54 = vpop.f32.mrb[49].mxu1 }
 0x820   :  { %1719 = vrot.lane.b32.xlu0 %v1672_v54, %s3003_s6 }
 0x822   :  { %v2751_v43 = vpop.f32.mrb[50].mxu1 }
 0x823   :  { %1725 = vrot.lane.b32.xlu1 %v2751_v43, %s3003_s6  ;;  %v1682_v62 = vpop.f32.mrb[51].mxu1 }
 0x824   :  { %1723 = vrot.lane.b32.xlu0 %v1682_v62, %s3003_s6 }
 0x826   :  { %v2754_v63 = vpop.f32.mrb[52].mxu1 }
 0x827   :  { %1729 = vrot.lane.b32.xlu1 %v2754_v63, %s3003_s6  ;;  %v1692_v0 = vpop.f32.mrb[53].mxu1 }
 0x828   :  { %1727 = vrot.lane.b32.xlu0 %v1692_v0, %s3003_s6 }
 0x82a   :  { %v2757_v1 = vpop.f32.mrb[54].mxu1 }
 0x82b   :  { %1733 = vrot.lane.b32.xlu1 %v2757_v1, %s3003_s6  ;;  %v1702_v44 = vpop.f32.mrb[55].mxu1 }
 0x82c   :  { %1731 = vrot.lane.b32.xlu0 %v1702_v44, %s3003_s6 }
 0x891   :  { %v1722_v45 = vpop.permute.xlu1 %1721 }
 0x892   :  { %v1720_v2 = vpop.permute.xlu0 %1719  ;;  %v1744_v4 = vsel %vm776_vm3, %v2736_v49, %v1722_v45 }
 0x893   :  { %v1743_v3 = vsel %vm776_vm3, %v1632_v50, %v1720_v2 }
 0x894   :  { %2774 = vmatprep.mubr.msk.f32.mxu0 %vm189_vm0, %v1743_v3 }
 0x895   :  { %v1726_v5 = vpop.permute.xlu1 %1725  ;;  %2775 = vmatmul.mubr.msk.f32.vlgmr.msra.gmra.mrb[48].mxu0 %vm189_vm0, %v1744_v4 }
 0x896   :  { %v1724_v6 = vpop.permute.xlu0 %1723  ;;  %v1746_v9 = vsel %vm776_vm3, %v2739_v57, %v1726_v5  ;;  %2956 = vmatpush3.bf16.msra.mxu0 %v2953_v33 }
 0x897   :  { %v1745_v7 = vsel %vm776_vm3, %v1642_v42, %v1724_v6 }
 0x898   :  { %2777 = vmatprep.mubr.msk.f32.mxu0 %vm189_vm0, %v1745_v7 }
 0x899   :  { %v1730_v10 = vpop.permute.xlu1 %1729  ;;  %2778 = vmatmul.mubr.msk.f32.gmra.mrb[50].mxu0 %vm189_vm0, %v1746_v9 }
 0x89a   :  { %v1728_v46 = vpop.permute.xlu0 %1727  ;;  %v1748_v55 = vsel %vm776_vm3, %v2742_v53, %v1730_v10  ;;  %v3004_v53 = vmov 0.0|0.0  }
 0x89b   :  { %v1747_v11 = vsel %vm776_vm3, %v1652_v59, %v1728_v46  ;;  %2957 = vmatprep.subr.bf16.mxu1 %v3004_v53  ;;  %v2243_v59 = vld [vmem:[%s3617_s3 + $0x109] ss:$0 sm:$0xff] }
 0x89c   :  { %2780 = vmatprep.mubr.msk.f32.mxu0 %vm189_vm0, %v1747_v11  ;;  %v1543_v63 = vadd.f32 %v3526_v27, %v2243_v59  ;;  %v1538_v0 = vadd.f32 %v2243_v59, %v3528_v40  ;;  %v1553_v2 = vadd.f32 %v3530_v41, %v2243_v59  ;;  %v1548_v3 = vadd.f32 %v2243_v59, %v3532_v56 }
 0x89d   :  { %v1734_v12 = vpop.permute.xlu1 %1733  ;;  %2781 = vmatmul.mubr.msk.f32.gmra.mrb[52].mxu0 %vm189_vm0, %v1748_v55  ;;  %v1563_v6 = vadd.f32 %v3534_v47, %v2243_v59  ;;  %v1558_v7 = vadd.f32 %v2243_v59, %v3536_v48 }
 0x89e   :  { %v1732_v28 = vpop.permute.xlu0 %1731  ;;  %v1750_v30 = vsel %vm776_vm3, %v2745_v60, %v1734_v12  ;;  %v1533_v60 = vadd.f32 %v3522_v25, %v2243_v59 }
 0x89f   :  { %v1749_v29 = vsel %vm776_vm3, %v1662_v58, %v1732_v28  ;;  %v1528_v58 = vadd.f32 %v2243_v59, %v3524_v26  ;;  %v3007_v26 = vmov 0.0  }
 0x8a0   :  { %2783 = vmatprep.mubr.msk.f32.mxu0 %vm189_vm0, %v1749_v29  ;;  %2818 = vmatprep.mubr.msk.f32.mxu1 %vm3006_vm4, %v3007_v26 }
 0x8a1   :  { %2784 = vmatmul.mubr.msk.f32.gmra.mrb[54].mxu0 %vm189_vm0, %v1750_v30 }
 0x968   :  { %v2776_v35 = vpop.f32.mrb[48].mxu0 }
 0x969   :  { %v1851_v36 = vadd.f32 %v2776_v35, %v2268_v34  ;;  %v1845_v37 = vpop.f32.mrb[49].mxu0 }
 0x96a   :  { %v1846_v8 = vadd.f32 %v2268_v34, %v1845_v37 }
 0x96b   :  { %v1885_v52 = vmax.f32 %v1851_v36, 0.0 }
 0x96c   :  { %v1884_v51 = vmax.f32 %v1846_v8, 0.0  ;;  %v2779_v39 = vpop.f32.mrb[50].mxu0 }
 0x96d   :  { %v1861_v38 = vadd.f32 %v2779_v39, %v2268_v34  ;;  %v1855_v13 = vpop.f32.mrb[51].mxu0 }
 0x96e   :  { %v1856_v14 = vadd.f32 %v2268_v34, %v1855_v13  ;;  %2790 = vmatprep.mubr.msk.f32.mxu0 %vm427_vm2, %v1884_v51 }
 0x96f   :  { %2791 = vmatmul.mubr.msk.f32.vlgmr.msra.gmra.mrb[56].mxu0 %vm427_vm2, %v1885_v52  ;;  %v1887_v17 = vmax.f32 %v1861_v38, 0.0  ;;  %v2069_v38 = vld [vmem:[%s3615_s1] sm:$0xf] }
 0x970   :  { %v1886_v15 = vmax.f32 %v1856_v14, 0.0  ;;  %v2782_v16 = vpop.f32.mrb[52].mxu0 }
 0x971   :  { %v1871_v18 = vadd.f32 %v2782_v16, %v2268_v34  ;;  %v1865_v19 = vpop.f32.mrb[53].mxu0 }
 0x972   :  { %v1866_v20 = vadd.f32 %v2268_v34, %v1865_v19  ;;  %2793 = vmatprep.mubr.msk.f32.mxu0 %vm427_vm2, %v1886_v15 }
 0x973   :  { %2794 = vmatmul.mubr.msk.f32.gmra.mrb[58].mxu0 %vm427_vm2, %v1887_v17  ;;  %v1889_v23 = vmax.f32 %v1871_v18, 0.0 }
 0x974   :  { %v1888_v21 = vmax.f32 %v1866_v20, 0.0  ;;  %v2785_v22 = vpop.f32.mrb[54].mxu0 }
 0x975   :  { %v1881_v24 = vadd.f32 %v2785_v22, %v2268_v34  ;;  %v1875_v49 = vpop.f32.mrb[55].mxu0 }
 0x976   :  { %v1876_v50 = vadd.f32 %v2268_v34, %v1875_v49  ;;  %2796 = vmatprep.mubr.msk.f32.mxu0 %vm427_vm2, %v1888_v21 }
 0x977   :  { %2797 = vmatmul.mubr.msk.f32.gmra.mrb[60].mxu0 %vm427_vm2, %v1889_v23  ;;  %v1891_v42 = vmax.f32 %v1881_v24, 0.0 }
 0x978   :  { %v1890_v57 = vmax.f32 %v1876_v50, 0.0 }
 0x97a   :  { %2799 = vmatprep.mubr.msk.f32.mxu0 %vm427_vm2, %v1890_v57 }
 0x97b   :  { %2800 = vmatmul.mubr.msk.f32.gmra.mrb[62].mxu0 %vm427_vm2, %v1891_v42 }
 0xa42   :  { %v2792_v61 = vpop.f32.mrb[56].mxu0 }
 0xa43   :  { %v2022_v54 = vadd.f32 %v2792_v61, %v1533_v60  ;;  %2039 = vrot.lane.b32.xlu1 %v2792_v61, %s3005_s30  ;;  %v1982_v43 = vpop.f32.mrb[57].mxu0 }
 0xa44   :  { %v2021_v62 = vadd.f32 %v1982_v43, %v1528_v58  ;;  %2037 = vrot.lane.b32.xlu0 %v1982_v43, %s3005_s30 }
 0xa46   :  { %v2795_v1 = vpop.f32.mrb[58].mxu0 }
 0xa47   :  { %v2024_v44 = vadd.f32 %v2795_v1, %v1543_v63  ;;  %2043 = vrot.lane.b32.xlu1 %v2795_v1, %s3005_s30  ;;  %v1992_v25 = vpop.f32.mrb[59].mxu0 }
 0xa48   :  { %v2023_v45 = vadd.f32 %v1992_v25, %v1538_v0  ;;  %2041 = vrot.lane.b32.xlu0 %v1992_v25, %s3005_s30 }
 0xa4a   :  { %v2798_v4 = vpop.f32.mrb[60].mxu0 }
 0xa4b   :  { %v2026_v5 = vadd.f32 %v2798_v4, %v1553_v2  ;;  %2047 = vrot.lane.b32.xlu1 %v2798_v4, %s3005_s30  ;;  %v2002_v27 = vpop.f32.mrb[61].mxu0 }
 0xa4c   :  { %v2025_v40 = vadd.f32 %v2002_v27, %v1548_v3  ;;  %2045 = vrot.lane.b32.xlu0 %v2002_v27, %s3005_s30 }
 0xa4e   :  { %v2801_v9 = vpop.f32.mrb[62].mxu0 }
 0xa4f   :  { %v2028_v10 = vadd.f32 %v2801_v9, %v1563_v6  ;;  %2051 = vrot.lane.b32.xlu1 %v2801_v9, %s3005_s30  ;;  %v2012_v46 = vpop.f32.mrb[63].mxu0 }
 0xa50   :  { %v2027_v41 = vadd.f32 %v2012_v46, %v1558_v7  ;;  %2049 = vrot.lane.b32.xlu0 %v2012_v46, %s3005_s30 }
 0xab5   :  { %v2040_v56 = vpop.permute.xlu1 %2039 }
 0xab6   :  { %v2062_v11 = vadd.f32 %v2040_v56, %v2022_v54  ;;  %v2038_v55 = vpop.permute.xlu0 %2037 }
 0xab7   :  { %v2061_v12 = vadd.f32 %v2038_v55, %v2021_v62 }
 0xab9   :  { %v2958_v28 = vpack.c.bf16 %v2062_v11, %v2061_v12  ;;  %v2044_v29 = vpop.permute.xlu1 %2043 }
 0xaba   :  { %v2064_v30 = vadd.f32 %v2044_v29, %v2024_v44  ;;  %v2042_v31 = vpop.permute.xlu0 %2041 }
 0xabb   :  { %v2063_v32 = vadd.f32 %v2042_v31, %v2023_v45  ;;  %2959 = vmatpush3.bf16.msra.mxu1 %v2958_v28 }
 0xabc   :  { %2960 = vmatprep.subr.bf16.mxu1 %v3004_v53 }
 0xabd   :  { %v2961_v47 = vpack.c.bf16 %v2064_v30, %v2063_v32  ;;  %v2048_v48 = vpop.permute.xlu1 %2047 }
 0xabe   :  { %v2066_v33 = vadd.f32 %v2048_v48, %v2026_v5  ;;  %v2046_v34 = vpop.permute.xlu0 %2045 }
 0xabf   :  { %v2065_v35 = vadd.f32 %v2046_v34, %v2025_v40  ;;  %2962 = vmatpush3.bf16.msra.mxu1 %v2961_v47 }
 0xac0   :  { %2963 = vmatprep.subr.bf16.mxu1 %v3004_v53 }
 0xac1   :  { %v2964_v36 = vpack.c.bf16 %v2066_v33, %v2065_v35  ;;  %v2052_v37 = vpop.permute.xlu1 %2051 }
 0xac2   :  { %v2068_v8 = vadd.f32 %v2052_v37, %v2028_v10  ;;  %v2050_v51 = vpop.permute.xlu0 %2049 }
 0xac3   :  { %v2067_v39 = vadd.f32 %v2050_v51, %v2027_v41  ;;  %2965 = vmatpush3.bf16.msra.mxu1 %v2964_v36 }
 0xac4   :  { %2966 = vmatprep.subr.bf16.mxu1 %v3004_v53 }
 0xac5   :  { %v2967_v52 = vpack.c.bf16 %v2068_v8, %v2067_v39 }
 0xac7   :  { %2968 = vmatpush3.bf16.msra.mxu1 %v2967_v52 }
 0xaca   :  { %2819 = vmatmul.mubr.msk.f32.vlgmr.msra.gmra.mrb[56].mxu1 %vm189_vm0, %v2069_v38 }
 0xb9d   :  { %v2139_v13 = vpop.f32.mrb[56].mxu1 }
 0xb9e   :  { %2144 = vst.msk [vmem:[#allocation2] sm:$0xf] %vm2143_vm5, %v2139_v13  ;;  %v2820_v14 = vpop.f32.mrb[57].mxu1 }
 0xb9f   :  { %2988 = shalt.err (!%p2985_p4)
}
 0xba0   :  { %s2989_s1 = scalar_lea.hbm %s3618_s4, 64 }
 0xba1   :  { %p2990_p5 = scmp.ne.s32.totalorder %s3618_s4, %s2989_s1  ;;  %p2993_p6 = scmp.lt.u32.totalorder %s2989_s1, %s3618_s4 }
 0xba3   :  { %p2995_p7 = pnand %p2993_p6, %p2990_p5 }
 0xba5   :  { %2998 = shalt.err (!%p2995_p7)
}
 0xba6   :  { %2154 = dma.vmem_to_hbm [thread:$0]  %s2152_s8, 64, %s3618_s4, [#allocation3]  }
 0xba7   :  { %2999 = dma.done.wait [#allocation3], 64  }
 0xba8   :  { %3000 = vsyncadd [#allocation3], 4294967232 }
 0xba9   :  { %2158 = vsyncpa [#allocation3], 1 }

</bundles_post_ra>
